<compile_context>
chip_gen: v7x
topology: tpu7x:2x2x1
jax: 0.10.0
libtpu: 0.0.40
codegen_flags: <defaults>
</compile_context>

<pallas_src>
from functools import partial

import jax
import jax.numpy as jnp
from jax.experimental import pallas as pl
from jax.experimental.pallas import tpu as pltpu


# ---------------------------------------------------------------------------
# Generation-aware VMEM budgets.
# ---------------------------------------------------------------------------
def _generation_params():
    """Returns (block_budget_bytes, vmem_limit_bytes, num_tensorcores)."""
    vmem_bytes = None
    kind = ""
    try:
        kind = jax.devices()[0].device_kind.lower()
    except Exception:
        pass
    try:
        info = pltpu.get_tpu_info()
        for attr in ("vmem_capacity_bytes", "vmem_size_bytes", "vmem_bytes"):
            v = getattr(info, attr, None)
            if isinstance(v, int) and v > 0:
                vmem_bytes = v
                break
    except Exception:
        pass

    looks_v7 = ("v7" in kind) or ("7x" in kind) or (
        vmem_bytes is not None and vmem_bytes <= 96 * 1024 * 1024)
    if looks_v7:
        # v7x: 64 MiB VMEM per TensorCore, 2 TCs/chip -> smaller blocks,
        # tighter scoped limit (4 pipelined buffers * 6 MiB = 24 MiB << 48).
        return 6 * 1024 * 1024, 48 * 1024 * 1024, 2
    if (vmem_bytes is not None and vmem_bytes >= 120 * 1024 * 1024) or \
       ("v5" in kind) or ("v6" in kind):
        # v5e / v6e: 128 MiB physical VMEM, single TensorCore -> big blocks
        # keep more shapes on the 2x-traffic fused path, fewer grid steps.
        return 12 * 1024 * 1024, 64 * 1024 * 1024, 1
    # Unknown hardware: conservative settings safe on every generation.
    return 4 * 1024 * 1024, 32 * 1024 * 1024, 2


# ---------------------------------------------------------------------------
# Fused single-pass kernel: pool + MLP + scale on whole (Bblk, C, HW) blocks.
# ---------------------------------------------------------------------------
def _cam_fused_kernel(x_ref, w1t_ref, w2t_ref, o_ref):
    # Pooled channel means in f32.  The cast feeds only the lane reduction,
    # so no full-block f32 temporary stays live across the MLP matmuls.
    pooled = jnp.mean(x_ref[...].astype(jnp.float32), axis=-1)   # (Bblk, C)
    h = jax.nn.softplus(
        jnp.dot(pooled, w1t_ref[...], preferred_element_type=jnp.float32))
    y = jax.nn.sigmoid(
        jnp.dot(h, w2t_ref[...], preferred_element_type=jnp.float32))
    # Re-read x and scale in the native dtype; gate is cast exactly once.
    o_ref[...] = x_ref[...] * y.astype(o_ref.dtype)[:, :, None]


# ---------------------------------------------------------------------------
# Two-pass fallback, pass 1: tiled global sum over HW -> (B, C, 1) f32 sums.
# The tiny MLP is done in plain JAX between the two pallas_calls.
# ---------------------------------------------------------------------------
def _pool_kernel(x_ref, sum_ref, *, tail):
    t = pl.program_id(1)

    @pl.when(t == 0)
    def _():
        sum_ref[...] = jnp.zeros_like(sum_ref)

    if tail:  # static: only generated when HW % thw != 0
        @pl.when(t < pl.num_programs(1) - 1)
        def _():
            sum_ref[0] += jnp.sum(x_ref[0].astype(jnp.float32),
                                  axis=-1, keepdims=True)

        @pl.when(t == pl.num_programs(1) - 1)
        def _():
            x = x_ref[0].astype(jnp.float32)                    # (C, thw)
            lane = jax.lax.broadcasted_iota(jnp.int32, x.shape, 1)
            x = jnp.where(lane < tail, x, 0.0)                  # mask OOB lanes
            sum_ref[0] += jnp.sum(x, axis=-1, keepdims=True)
    else:
        sum_ref[0] += jnp.sum(x_ref[0].astype(jnp.float32),
                              axis=-1, keepdims=True)


# ---------------------------------------------------------------------------
# Two-pass fallback, pass 2: tiled channel re-weighting (native dtype).
# ---------------------------------------------------------------------------
def _scale_kernel(x_ref, g_ref, o_ref):
    o_ref[0] = x_ref[0] * g_ref[0].astype(o_ref.dtype)          # (C,thw)*(C,1)


def _choose_hw_tile(HW, C, itemsize, budget_bytes):
    cap = max(1, budget_bytes // (C * itemsize))
    if HW <= cap:
        return HW
    thw = max(128, (cap // 128) * 128)
    thw = min(thw, HW)
    if thw != HW and thw % 128 != 0:
        thw = 128 if HW >= 128 else HW
    return thw


def cam_forward(x, w1, w2, *, force_two_pass=False, hw_tile=None):
    """x: (B, C, H, W); w1: (C//16, C); w2: (C, C//16). Returns NCHW output."""
    B, C, H, W = x.shape
    HW = H * W
    Cr = w1.shape[0]
    itemsize = jnp.dtype(x.dtype).itemsize

    block_budget, vmem_limit, num_tc = _generation_params()

    # Free metadata reshape: NCHW is already (B, C, H*W)-contiguous.
    xr = x.reshape(B, C, HW)

    per_img_bytes = C * HW * itemsize
    use_fused = (not force_two_pass) and per_img_bytes <= block_budget

    if use_fused:
        # Maximize the batch block under the budget; on multi-TC parts keep
        # >= 2 grid steps (when B >= 2) so both TensorCores issue DMAs.
        # (For B == 1 the two-pass path is roofline-neutral — pass 1 is
        #  sequential over HW — so we keep the simpler fused kernel.)
        bblk = max(1, min(B, block_budget // per_img_bytes))
        if num_tc >= 2 and B >= 2:
            bblk = min(bblk, pl.cdiv(B, 2))
        nb = pl.cdiv(B, bblk)          # partial last block is fine: OOB batch
                                       # rows are never written back.

        w1t = jnp.asarray(w1).T                      # (C, Cr)
        w2t = jnp.asarray(w2).T                      # (Cr, C)

        out = pl.pallas_call(
            _cam_fused_kernel,
            out_shape=jax.ShapeDtypeStruct((B, C, HW), x.dtype),
            grid=(nb,),
            in_specs=[
                pl.BlockSpec((bblk, C, HW), lambda b: (b, 0, 0)),
                pl.BlockSpec((C, Cr), lambda b: (0, 0)),
                pl.BlockSpec((Cr, C), lambda b: (0, 0)),
            ],
            out_specs=pl.BlockSpec((bblk, C, HW), lambda b: (b, 0, 0)),
            compiler_params=pltpu.CompilerParams(
                dimension_semantics=("parallel",),
                vmem_limit_bytes=vmem_limit),
            cost_estimate=pl.CostEstimate(
                flops=2 * B * C * HW + 4 * B * C * Cr,
                transcendentals=B * (2 * Cr + C),
                bytes_accessed=2 * B * C * HW * itemsize + 8 * C * Cr),
        )(xr, w1t, w2t)
        return out.reshape(B, C, H, W)

    # ---------------- two-pass (large HW*C) path ----------------
    # Pass 1 only double-buffers its input block, so it can use ~2x the HW
    # tile of pass 2 under the same VMEM limit.
    if hw_tile is not None:
        thw1 = thw2 = hw_tile
    else:
        thw1 = _choose_hw_tile(HW, C, itemsize, 2 * block_budget)
        thw2 = _choose_hw_tile(HW, C, itemsize, block_budget)

    nhw1, tail1 = pl.cdiv(HW, thw1), HW % thw1
    nhw2 = pl.cdiv(HW, thw2)

    sums = pl.pallas_call(
        partial(_pool_kernel, tail=tail1),
        out_shape=jax.ShapeDtypeStruct((B, C, 1), jnp.float32),
        grid=(B, nhw1),
        in_specs=[pl.BlockSpec((1, C, thw1), lambda b, t: (b, 0, t))],
        out_specs=pl.BlockSpec((1, C, 1), lambda b, t: (b, 0, 0)),
        compiler_params=pltpu.CompilerParams(
            dimension_semantics=("parallel", "arbitrary"),
            vmem_limit_bytes=vmem_limit),
        cost_estimate=pl.CostEstimate(
            flops=B * C * HW, transcendentals=0,
            bytes_accessed=B * C * HW * itemsize + 4 * B * C),
    )(xr)

    # Tiny MLP (two matvecs + softplus + sigmoid) in plain JAX, f32.
    pooled = sums[:, :, 0] * (1.0 / HW)                              # (B, C)
    h = jax.nn.softplus(pooled @ jnp.asarray(w1).astype(jnp.float32).T)
    gate = jax.nn.sigmoid(h @ jnp.asarray(w2).astype(jnp.float32).T)
    gate = gate[:, :, None]                                          # (B, C, 1)

    out = pl.pallas_call(
        _scale_kernel,
        out_shape=jax.ShapeDtypeStruct((B, C, HW), x.dtype),
        grid=(B, nhw2),
        in_specs=[
            pl.BlockSpec((1, C, thw2), lambda b, t: (b, 0, t)),
            pl.BlockSpec((1, C, 1), lambda b, t: (b, 0, 0)),
        ],
        out_specs=pl.BlockSpec((1, C, thw2), lambda b, t: (b, 0, t)),
        compiler_params=pltpu.CompilerParams(
            dimension_semantics=("parallel", "parallel"),
            vmem_limit_bytes=vmem_limit),
        cost_estimate=pl.CostEstimate(
            flops=B * C * HW, transcendentals=0,
            bytes_accessed=2 * B * C * HW * itemsize + 4 * B * C),
    )(xr, gate)
    return out.reshape(B, C, H, W)


def cam_reference(x, w1, w2):
    """Pure-JAX reference matching the PyTorch module."""
    pooled = jnp.mean(x, axis=(2, 3))                  # (B, C)
    h = jax.nn.softplus(pooled @ w1.T)                 # (B, C//16)
    s = jax.nn.sigmoid(h @ w2.T)                       # (B, C)
    return x * s[:, :, None, None]


if __name__ == "__main__":
    B, C, H, W = 2, 32, 16, 16          # channels // 16 = 2
    Cr = C // 16

    key = jax.random.PRNGKey(0)
    kx, k1, k2 = jax.random.split(key, 3)
    x = jax.random.normal(kx, (B, C, H, W), dtype=jnp.float32)
    # 1x1-conv weights (spatial dims are 1x1 -> squeezed to matrices).
    w1 = jax.random.normal(k1, (Cr, C), dtype=jnp.float32) * (1.0 / jnp.sqrt(C))
    w2 = jax.random.normal(k2, (C, Cr), dtype=jnp.float32) * (1.0 / jnp.sqrt(Cr))

    ref = cam_reference(x, w1, w2)

    # Fused single-pass path (small feature map fits the VMEM budget).
    out = jax.block_until_ready(cam_forward(x, w1, w2))
    assert out.shape == (B, C, H, W)
    assert jnp.allclose(out, ref, atol=1e-5, rtol=1e-5)

    # Also exercise the tiled two-pass fallback used for large feature maps
    # (forced here with a 128-wide HW tile so the accumulator path runs).
    out2 = jax.block_until_ready(
        cam_forward(x, w1, w2, force_two_pass=True, hw_tile=128))
    assert jnp.allclose(out2, ref, atol=1e-5, rtol=1e-5)

    print("KERNEL_OK")
</pallas_src>

<mosaic_0001>
module attributes {stable_mosaic.version = 11 : i64} {
  func.func @_cam_fused_kernel(%arg0: i32, %arg1: memref<1x32x256xf32, #tpu.memory_space<vmem>>, %arg2: memref<32x2xf32, #tpu.memory_space<vmem>>, %arg3: memref<2x32xf32, #tpu.memory_space<vmem>>, %arg4: memref<1x32x256xf32, #tpu.memory_space<vmem>>) attributes {dimension_semantics = [#tpu.dimension_semantics<parallel>], iteration_bounds = array<i64: 2>, scalar_prefetch = 0 : i64, scratch_operands = 0 : i64, tpu.core_type = #tpu.core_type<tc>, window_params = [{transform_indices = @transform_0, window_bounds = array<i64: 1, 32, 256>}, {pipeline_mode = #tpu.pipeline_mode<synchronous>, transform_indices = @transform_1, window_bounds = array<i64: 32, 2>}, {pipeline_mode = #tpu.pipeline_mode<synchronous>, transform_indices = @transform_2, window_bounds = array<i64: 2, 32>}, {transform_indices = @transform_3, window_bounds = array<i64: 1, 32, 256>}]} {
    %c0 = arith.constant 0 : index
    %c0_0 = arith.constant 0 : index
    %c0_1 = arith.constant 0 : index
    %0 = vector.load %arg1[%c0, %c0_0, %c0_1] : memref<1x32x256xf32, #tpu.memory_space<vmem>>, vector<1x32x256xf32>
    %cst = arith.constant dense<0.000000e+00> : vector<1x32xf32>
    %1 = vector.multi_reduction <add>, %0, %cst [2] : vector<1x32x256xf32> to vector<1x32xf32>
    %cst_2 = arith.constant 2.560000e+02 : f32
    %2 = vector.broadcast %cst_2 : f32 to vector<1x32xf32>
    %3 = arith.divf %1, %2 : vector<1x32xf32>
    %c0_3 = arith.constant 0 : index
    %c0_4 = arith.constant 0 : index
    %4 = vector.load %arg2[%c0_3, %c0_4] : memref<32x2xf32, #tpu.memory_space<vmem>>, vector<32x2xf32>
    %cst_5 = arith.constant dense<0.000000e+00> : vector<1x2xf32>
    %5 = tpu.matmul %3, %4, %cst_5 {dimension_numbers = #tpu.dot_dimension_numbers<[1], [0], [0], [1], [0, 0, 1, 1], [], []>} : vector<1x32xf32>, vector<32x2xf32>, vector<1x2xf32> -> vector<1x2xf32>
    %cst_6 = arith.constant 0.000000e+00 : f32
    %6 = vector.broadcast %cst_6 : f32 to vector<1x2xf32>
    %7 = arith.maximumf %5, %6 : vector<1x2xf32>
    %8 = vector.broadcast %cst_6 : f32 to vector<1x2xf32>
    %9 = arith.subf %5, %8 : vector<1x2xf32>
    %10 = arith.cmpf one, %9, %9 : vector<1x2xf32>
    %11 = vector.broadcast %cst_6 : f32 to vector<1x2xf32>
    %12 = arith.addf %5, %11 : vector<1x2xf32>
    %13 = math.absf %9 : vector<1x2xf32>
    %cst_7 = arith.constant 0.000000e+00 : f32
    %14 = vector.broadcast %cst_7 : f32 to vector<1x2xf32>
    %15 = arith.subf %14, %13 : vector<1x2xf32>
    %16 = math.exp %15 : vector<1x2xf32>
    %17 = math.log1p %16 : vector<1x2xf32>
    %18 = arith.addf %7, %17 : vector<1x2xf32>
    %19 = arith.select %10, %12, %18 : vector<1x2xi1>, vector<1x2xf32>
    %c0_8 = arith.constant 0 : index
    %c0_9 = arith.constant 0 : index
    %20 = vector.load %arg3[%c0_8, %c0_9] : memref<2x32xf32, #tpu.memory_space<vmem>>, vector<2x32xf32>
    %cst_10 = arith.constant dense<0.000000e+00> : vector<1x32xf32>
    %21 = tpu.matmul %19, %20, %cst_10 {dimension_numbers = #tpu.dot_dimension_numbers<[1], [0], [0], [1], [0, 0, 1, 1], [], []>} : vector<1x2xf32>, vector<2x32xf32>, vector<1x32xf32> -> vector<1x32xf32>
    %22 = arith.negf %21 : vector<1x32xf32>
    %23 = math.exp %22 : vector<1x32xf32>
    %cst_11 = arith.constant 1.000000e+00 : f32
    %24 = vector.broadcast %cst_11 : f32 to vector<1x32xf32>
    %25 = arith.addf %24, %23 : vector<1x32xf32>
    %26 = arith.divf %24, %25 : vector<1x32xf32>
    %c0_12 = arith.constant 0 : index
    %c0_13 = arith.constant 0 : index
    %c0_14 = arith.constant 0 : index
    %27 = vector.load %arg1[%c0_12, %c0_13, %c0_14] : memref<1x32x256xf32, #tpu.memory_space<vmem>>, vector<1x32x256xf32>
    %28 = vector.shape_cast %26 : vector<1x32xf32> to vector<1x32x1xf32>
    %29 = vector.broadcast %28 : vector<1x32x1xf32> to vector<1x32x256xf32>
    %30 = arith.mulf %27, %29 : vector<1x32x256xf32>
    %c0_15 = arith.constant 0 : index
    %c0_16 = arith.constant 0 : index
    %c0_17 = arith.constant 0 : index
    %31 = vector.load %arg4[%c0_15, %c0_16, %c0_17] : memref<1x32x256xf32, #tpu.memory_space<vmem>>, vector<1x32x256xf32>
    tpu.vector_store %arg4[%c0_15, %c0_16, %c0_17], %30 {strides = array<i32>} : memref<1x32x256xf32, #tpu.memory_space<vmem>>, vector<1x32x256xf32>,
    return
  }
  func.func @transform_0(%arg0: i32) -> (i32, i32, i32) {
    %c0_i32 = arith.constant 0 : i32
    %c0_i32_0 = arith.constant 0 : i32
    %c0_i32_1 = arith.constant 0 : i32
    return %arg0, %c0_i32, %c0_i32_0 : i32, i32, i32
  }
  func.func @transform_1(%arg0: i32) -> (i32, i32) {
    %c0_i32 = arith.constant 0 : i32
    %c0_i32_0 = arith.constant 0 : i32
    %c0_i32_1 = arith.constant 0 : i32
    return %c0_i32, %c0_i32_0 : i32, i32
  }
  func.func @transform_2(%arg0: i32) -> (i32, i32) {
    %c0_i32 = arith.constant 0 : i32
    %c0_i32_0 = arith.constant 0 : i32
    %c0_i32_1 = arith.constant 0 : i32
    return %c0_i32, %c0_i32_0 : i32, i32
  }
  func.func @transform_3(%arg0: i32) -> (i32, i32, i32) {
    %c0_i32 = arith.constant 0 : i32
    %c0_i32_0 = arith.constant 0 : i32
    %c0_i32_1 = arith.constant 0 : i32
    return %arg0, %c0_i32, %c0_i32_0 : i32, i32, i32
  }
}

</mosaic_0001>

<bundles_post_ra>
// kernel: tpu_custom_call.1
= control target key start
LH: loop header
LB: loop body
LE: loop exit
PB: predicated region body
PF: predicated region fallthrough
CT: control target
= control target key end

     0   :  { %8 = vsyncpa [#allocation3], 0  ;;  %s1004_s0 = inlined_call_operand.hbm [shape: f32[2,32,256], index: 0, kind: input, shape index: {}]   ;;  %s1005_s1 = inlined_call_operand.vmem [shape: f32[32,2], index: 1, kind: input, shape index: {}]   ;;  %s1006_s2 = inlined_call_operand.vmem [shape: f32[2,32], index: 2, kind: input, shape index: {}]   ;;  %s1007_s3 = inlined_call_operand.hbm [shape: f32[2,32,256], index: 3, kind: output, shape index: {}]  }
   0x1   :  { %10 = vsyncpa [#allocation3 + $0x1], 0 }
   0x2   :  { %11 = vsyncpa [#allocation4], 0 }
   0x3   :  { %13 = vsyncpa [#allocation4 + $0x1], 0  ;;  %s784_s12 = smov 0   ;;  %s786_s13 = smov 0  }
   0x4   :  { %s788_s14 = smov 0   ;;  %s790_s15 = smov 0  }
   0x5 LB: > { %s805_s16 = sadd.s32 4294967295, %s753_s15   ;;  %s547_s17 = sadd.s32 4294967294, %s753_s15   ;;  %s753_s15 = sphi %s790_s15, %s1020_s15   ;;  %s749_s14 = sphi %s788_s14, %s1019_s14   ;;  %s745_s13 = sphi %s786_s13, %s1018_s13   ;;  %s741_s12 = sphi %s784_s12, %s1017_s12  }
   0x6   : > { %s809_s18 = sadd.s32 1, %s753_s15   ;;  %s26_s19 = sadd.s32 1, %s749_s14 }
   0x7   : > { %s23_s20 = ssub.s32 %s753_s15, %s809_s18  ;;  %p33_p0 = scmp.ne.s32.totalorder %s749_s14, %s745_s13 }
   0x8   : > { %p24_p1 = scmp.eq.s32.totalorder %s23_s20, 0  ;;  %p34_p2 = scmp.eq.s32.totalorder %s753_s15, 0 }
   0x9   : > { %p39_p3 = scmp.ne.s32.totalorder %s745_s13, %s741_s12  ;;  %p40_p4 = scmp.eq.s32.totalorder %s805_s16, 0 }
   0xa   : > { %s821_s21 = scalar_select %p24_p1, %s749_s14, %s26_s19  }
   0xb   : > { %p823_p5 = por %p34_p2, %p33_p0  ;;  %p827_p6 = por %p40_p4, %p39_p3 }
   0xc   : > { %p105_p7 = scmp.eq.s32.totalorder %s805_s16, 1  ;;  %p111_p8 = scmp.eq.s32.totalorder %s547_s17, 1 }
   0xd   : > { %p608_p10 = scmp.lt.s32.totalorder %s753_s15, 2  ;;  %s137_s26 = sand.u32 1, %s749_s14  }
   0xe   : > { %p834_p11 = por %p105_p7, %p33_p0  ;;  %p838_p12 = por %p111_p8, %p39_p3 }
   0xf   : > { %s565_s27 = sshll.u32 %s753_s15, 10  ;;  %s550_s28 = sshll.u32 %s137_s26, 6 }
  0x10   : > { %s1011_s24 = scalar_select %p834_p11, 1, 0 }
  0x11   : > { %s1012_s25 = scalar_select %p838_p12, 1, 0 }
  0x12   : > { %s847_s4 = scalar_lea.hbm %s1004_s0, %s565_s27  ;;  %s141_s5 = scalar_lea.vmem [#allocation2], %s550_s28 }
  0x13   : > { %s148_s6 = sshll.u32 %s141_s5, 4  ;;  %p851_p13 = pnand %p608_p10, %p823_p5  ;;  %s855_s6 = int_to_ptr.vmem [resolvable:$true] %s148_s6 }
  0x14   : > { %s857_s8 = scalar_lea.sflag [#allocation3], %s137_s26  ;;  %s657_s9 = scalar_lea.hbm %s847_s4, 1024 }
  0x15   : > { %p658_p0 = scmp.ne.s32.totalorder %s847_s4, %s657_s9  ;;  %p659_p1 = pneg %p851_p13 }
  0x16   : > { %s662_s17 = scalar_lea.hbm %s1004_s0, 2048  ;;  %p663_p4 = scmp.lt.u32.totalorder %s847_s4, %s1004_s0 }
  0x17   : > { %p660_p2 = pnand %p659_p1, %p658_p0  ;;  %p664_p5 = scmp.lt.u32.totalorder %s662_s17, %s657_s9 }
  0x18   : > { %p666_p8 = scmp.lt.u32.totalorder %s657_s9, %s847_s4 }
  0x19   : > { %p661_p3 = pneg %p660_p2  ;;  %p665_p7 = por %p664_p5, %p663_p4 }
  0x1b   : > { %p667_p10 = por %p666_p8, %p665_p7 }
  0x1d   : > { %p668_p9 = pnand %p667_p10, %p661_p3 }
  0x1f   : > { %671 = shalt.err (!%p668_p9)
}
  0x20   : > { %s672_s22 = scalar_lea.vmem %s855_s6, 1024  ;;  %s755_s26 = smov [#allocation2]  }
  0x21   : > { %p673_p0 = scmp.ne.s32.totalorder %s855_s6, %s672_s22  ;;  %s677_s27 = sshll.u32 %s755_s26, 4  ;;  %s678_s27 = int_to_ptr.vmem [resolvable:$false] %s677_s27 }
  0x22   : > { %s679_s28 = scalar_lea.vmem %s678_s27, 2048  ;;  %p680_p11 = scmp.lt.s32.totalorder %s855_s6, %s678_s27 }
  0x23   : > { %p675_p2 = pnand %p673_p0, %p659_p1  ;;  %p681_p4 = scmp.lt.s32.totalorder %s679_s28, %s672_s22 }
  0x25   : > { %p676_p12 = pneg %p675_p2  ;;  %p682_p5 = por %p681_p4, %p680_p11 }
  0x27   : > { %p683_p7 = pnand %p682_p5, %p676_p12 }
  0x29   : > { %686 = shalt.err (!%p683_p7)
}
  0x2a   : > { %s756_s29 = smov 256   ;;  %s757_s30 = smov 16  }
  0x2b   : > { %603 = dma.hbm_to_vmem [thread:$0]  (!%p851_p13), %s847_s4, 1024, %s855_s6, %s857_s8, %s756_s29, %s756_s29, %s757_s30  }
  0x2c   : > { %p553_p9 = scmp.ge.s32.totalorder %s753_s15, 1  ;;  %p156_p1 = scmp.lt.s32.totalorder %s753_s15, 3 }
  0x2e   : > { %p157_p3 = pnand %p553_p9, %p156_p1 }
  0x2f   : > { %s888_s5 = sand.u32 (!%p157_p3), 1, %s745_s13  }
  0x30   : > { %160 = sbr.rel (%p157_p3) target bundleno = 840 (0x348), region = 32  ;;  %s554_s9 = sshll.u32 (!%p157_p3), %s888_s5, 6 }
  0x31   : > { %s163_s10 = scalar_lea.sflag (!%p157_p3), [#allocation3], %s888_s5  ;;  %s166_s11 = scalar_lea.vmem (!%p157_p3), [#allocation2], %s554_s9 }
  0x37   : > { %732 = dma.done.wait (%p827_p6), %s163_s10, 1024  }
  0x38   : > { %734 = vsyncadd (%p827_p6), %s163_s10, 4294966272  ;;  %v898_v0 = vld [vmem:[%s166_s11] sm:$0xff]  ;;  %v900_v1 = vld [vmem:[%s166_s11 + $0x8] sm:$0xff]  ;;  %v758_v15 = vmov 0.0|0.0   ;;  %vm759_vm0 = vmmov 0   ;;  %v760_v19 = vmov 0.0   ;;  %v222_v20 = vlaneseq }
  0x39   : > { %v902_v2 = vld [vmem:[%s166_s11 + $0x20] sm:$0xff]  ;;  %v197_v3 = vadd.f32 %v900_v1, %v898_v0  ;;  %v906_v4 = vld [vmem:[%s166_s11 + $0x28] sm:$0xff]  ;;  %v908_v5 = vld [vmem:[%s166_s11 + $0x10] sm:$0xff]  ;;  %590 = vmatprep.subr.bf16.mxu0 %v758_v15  ;;  %582 = vmatprep.mubr.msk.f32.mxu0 %vm759_vm0, %v760_v19  ;;  %vm233_vm1 = vcmask 130112   ;;  %vm240_vm2 = vcmask 195712   ;;  %vm247_vm3 = vcmask 261312  }
  0x3a   : > { %v910_v6 = vld [vmem:[%s166_s11 + $0x18] sm:$0xff]  ;;  %v203_v7 = vadd.f32 %v906_v4, %v902_v2  ;;  %v914_v8 = vld [vmem:[%s166_s11 + $0x30] sm:$0xff]  ;;  %v214_v12 = vld [vmem:[%s1005_s1] sm:$0xff]  ;;  %585 = vmatprep.subr.mxu1 %v760_v19  ;;  %587 = vmatprep.mubr.msk.f32.mxu1 %vm759_vm0, %v760_v19  ;;  %v223_v21 = vand.u32 127, %v222_v20  ;;  %v934_v22 = vshrl.u32 %v222_v20, 7  ;;  %vm249_vm4 = vcmask 261120  }
  0x3b   : > { %v916_v9 = vld [vmem:[%s166_s11 + $0x38] sm:$0xff]  ;;  %198 = vadd.xlane.f32.xlu0 %v197_v3  ;;  %v200_v10 = vadd.f32 %v910_v6, %v908_v5  ;;  %v215_v13 = vld [vmem:[%s1005_s1 + $0x8] sm:$0xff]  ;;  %v216_v16 = vld [vmem:[%s1005_s1 + $0x10] sm:$0xff]  ;;  %vm345_vm5 = vcmask 1041408   ;;  %vm341_vm7 = vcmask 15360   ;;  %s188_s27 = scalar_lea.vmem [#allocation5], %s554_s9 }
  0x3c   : > { %204 = vadd.xlane.f32.xlu1 %v203_v7  ;;  %v206_v11 = vadd.f32 %v916_v9, %v914_v8  ;;  %v591_v14 = vpack.c.bf16 %v215_v13, %v214_v12  ;;  %v217_v17 = vld [vmem:[%s1005_s1 + $0x18] sm:$0xff]  ;;  %v228_v23 = vadd.s32 4294967288, %v223_v21  ;;  %v235_v25 = vadd.s32 4294967280, %v223_v21  ;;  %v340_v45 = vld [vmem:[%s1006_s2] sm:$0x3]  ;;  %s474_s28 = sshll.u32 %s188_s27, 4  ;;  %s953_s28 = int_to_ptr.vmem [resolvable:$true] %s474_s28 }
  0x3d   : > { %v594_v18 = vpack.c.bf16 %v217_v17, %v216_v16  ;;  %v242_v26 = vadd.s32 4294967272, %v223_v21  ;;  %v226_v28 = vsub.s32 %v223_v21, %v934_v22  ;;  %586 = vmatpush3.msk.msra.mxu1 %vm345_vm5, %v340_v45  ;;  %v427_v12 = vsub.s32 0, %v934_v22  ;;  %s566_s29 = sshll.u32 %s805_s16, 10  ;;  %s461_s16 = scalar_lea.sflag [#allocation4], %s888_s5 }
  0x3e   : > { %592 = vmatpush3.bf16.msra.mxu0 %v591_v14  ;;  %v231_v30 = vsub.s32 %v228_v23, %v934_v22  ;;  %v238_v31 = vsub.s32 %v235_v25, %v934_v22  ;;  %s958_s10 = scalar_lea.hbm %s1007_s3, %s566_s29  ;;  %s687_s11 = scalar_lea.vmem %s953_s28, 1024 }
  0x3f   : > { %201 = vadd.xlane.f32.xlu0 %v200_v10  ;;  %593 = vmatprep.subr.bf16.mxu0 %v758_v15  ;;  %v245_v34 = vsub.s32 %v242_v26, %v934_v22  ;;  %p688_p6 = scmp.ne.s32.totalorder %s953_s28, %s687_s11  ;;  %p1014_p11 = scmp.ne.s32.totalorder %s1011_s24, 0 }
  0x40   : > { %207 = vadd.xlane.f32.xlu1 %v206_v11  ;;  %s761_s23 = smov [#allocation5]  }
  0x41   : > { %p689_p12 = pnand %p688_p6, %p1014_p11  ;;  %s691_s4 = sshll.u32 %s761_s23, 4  ;;  %s692_s4 = int_to_ptr.vmem [resolvable:$false] %s691_s4 }
  0x42   : > { %595 = vmatpush3.bf16.msra.mxu0 %v594_v18  ;;  %s693_s6 = scalar_lea.vmem %s692_s4, 2048  ;;  %p694_p8 = scmp.lt.s32.totalorder %s953_s28, %s692_s4 }
  0x43   : > { %p690_p13 = pneg %p689_p12  ;;  %p695_p10 = scmp.lt.s32.totalorder %s693_s6, %s687_s11 }
  0x45   : > { %p696_p0 = por %p695_p10, %p694_p8 }
  0x47   : > { %p697_p2 = pnand %p696_p0, %p690_p13 }
  0xc8   : > { %v199_v24 = vpop.xlane.xlu0 %198 }
  0xc9   : > { %v205_v27 = vpop.xlane.xlu1 %204  ;;  %v210_v29 = vmul.f32 0.00390625, %v199_v24 }
  0xca   : > { %v212_v32 = vmul.f32 0.00390625, %v205_v27 }
  0xcb   : > { %v227_v38 = vrot.slane %v210_v29, %v226_v28 }
  0xcc   : > { %v202_v33 = vpop.xlane.xlu0 %201  ;;  %v239_v40 = vrot.slane %v212_v32, %v238_v31 }
  0xcd   : > { %v211_v35 = vmul.f32 0.00390625, %v202_v33  ;;  %v208_v36 = vpop.xlane.xlu1 %207 }
  0xce   : > { %v213_v37 = vmul.f32 0.00390625, %v208_v36 }
  0xcf   : > { %v232_v39 = vrot.slane %v211_v35, %v231_v30 }
  0xd0   : > { %v246_v41 = vrot.slane %v213_v37, %v245_v34 }
  0xd1   : > { %v234_v42 = vsel %vm233_vm1, %v232_v39, %v227_v38 }
  0xd2   : > { %v241_v43 = vsel %vm240_vm2, %v239_v40, %v234_v42 }
  0xd3   : > { %v248_v44 = vsel %vm247_vm3, %v246_v41, %v241_v43 }
  0xd4   : > { %583 = vmatmul.mubr.msk.f32.vlgmr.msra.gmra.mrb[0].mxu0 %vm249_vm4, %v248_v44 }
 0x1a7   : > { %v318_v46 = vpop.f32.mrb[0].mxu0 }
 0x1a8   : > { %v325_v47 = vand.u32 2147483647, %v318_v46  ;;  %v584_v48 = vpop.f32.mrb[1].mxu0  ;;  %v322_v59 = vmax.f32 %v318_v46, 0.0  ;;  %vm323_vm8 = vcmp.ne.f32.partialorder %v318_v46, %v318_v46 }
 0x1aa   : > { %v326_v49 = vsub.f32 0.0, %v325_v47 }
 0x1ac   : > { %v327_v50 = vmul.f32 1.442695, %v326_v49 }
 0x1ae   : > { %649 = vpow2.f32 %v327_v50 }
 0x1b8   : > { %v650_v51 = vpop.eup %649 }
 0x1b9   : > { %v329_v52 = vadd.f32 1.0, %v650_v51  ;;  %v332_v53 = vmul.f32 -0.5, %v650_v51  ;;  %v335_v55 = vand.u32 2147483647, %v650_v51 }
 0x1bb   : > { %651 = vlog2.f32 %v329_v52  ;;  %v333_v54 = vadd.f32 1.0, %v332_v53  ;;  %vm336_vm6 = vcmp.lt.f32.partialorder %v335_v55, 0.0004427343 }
 0x1bd   : > { %v334_v58 = vmul.f32 %v650_v51, %v333_v54 }
 0x1c5   : > { %v652_v56 = vpop.eup %651 }
 0x1c6   : > { %v331_v57 = vmul.f32 0.6931472, %v652_v56 }
 0x1c8   : > { %v337_v60 = vsel %vm336_vm6, %v334_v58, %v331_v57 }
 0x1c9   : > { %v338_v61 = vadd.f32 %v337_v60, %v322_v59 }
 0x1cb   : > { %v339_v62 = vsel %vm323_vm8, %v318_v46, %v338_v61 }
 0x1cc   : > { %588 = vmatmul.mubr.msk.f32.vlgmr.msra.gmra.mrb[0].mxu1 %vm341_vm7, %v339_v62 }
 0x29f   : > { %v415_v63 = vpop.f32.mrb[0].mxu1 }
 0x2a0   : > { %v559_v3 = vmul.f32 -1.442695, %v415_v63  ;;  %v589_v7 = vpop.f32.mrb[1].mxu1 }
 0x2a2   : > { %653 = vpow2.f32 %v559_v3 }
 0x2ac   : > { %v654_v10 = vpop.eup %653 }
 0x2ad   : > { %v422_v11 = vadd.f32 1.0, %v654_v10 }
 0x2af   : > { %655 = vrcp.f32 %v422_v11 }
 0x2b9   : > { %v656_v13 = vpop.eup %655 }
 0x2ba   : > { %v428_v14 = vrot.slane %v656_v13, %v427_v12 }
 0x2bc   : > { %434 = vbcast.lane.b32.xlu1 %v428_v14, 264  ;;  %430 = vbcast.lane.b32.xlu0 %v428_v14, 256 }
 0x2c0   : > { %438 = vbcast.lane.b32.xlu1 %v428_v14, 272 }
 0x2c4   : > { %442 = vbcast.lane.b32.xlu1 %v428_v14, 280 }
 0x32e   : > { %v435_v15 = vpop.permute.xlu1 %434  ;;  %v431_v16 = vpop.permute.xlu0 %430 }
 0x32f   : > { %v446_v17 = vmul.f32 %v435_v15, %v908_v5  ;;  %v447_v18 = vmul.f32 %v435_v15, %v910_v6  ;;  %v444_v19 = vmul.f32 %v431_v16, %v898_v0  ;;  %v445_v20 = vmul.f32 %v431_v16, %v900_v1 }
 0x331   : > { %454 = vst [vmem:[%s188_s27 + $0x10] sm:$0xff] %v446_v17  ;;  %455 = vst [vmem:[%s188_s27 + $0x18] sm:$0xff] %v447_v18 }
 0x332   : > { %452 = vst [vmem:[%s188_s27] sm:$0xff] %v444_v19  ;;  %453 = vst [vmem:[%s188_s27 + $0x8] sm:$0xff] %v445_v20  ;;  %v439_v21 = vpop.permute.xlu1 %438 }
 0x333   : > { %v448_v22 = vmul.f32 %v439_v21, %v902_v2  ;;  %v449_v5 = vmul.f32 %v439_v21, %v906_v4 }
 0x335   : > { %456 = vst [vmem:[%s188_s27 + $0x20] sm:$0xff] %v448_v22  ;;  %457 = vst [vmem:[%s188_s27 + $0x28] sm:$0xff] %v449_v5 }
 0x336   : > { %v443_v0 = vpop.permute.xlu1 %442 }
 0x337   : > { %v450_v1 = vmul.f32 %v443_v0, %v914_v8  ;;  %v451_v2 = vmul.f32 %v443_v0, %v916_v9 }
 0x339   : > { %458 = vst [vmem:[%s188_s27 + $0x30] sm:$0xff] %v450_v1  ;;  %459 = vst [vmem:[%s188_s27 + $0x38] sm:$0xff] %v451_v2 }
 0x33a   : > { %700 = shalt.err (!%p697_p2)
}
 0x33b   : > { %s701_s7 = scalar_lea.hbm %s958_s10, 1024  ;;  %s705_s19 = scalar_lea.hbm %s1007_s3, 2048 }
 0x33c   : > { %p702_p4 = scmp.ne.s32.totalorder %s958_s10, %s701_s7  ;;  %p706_p9 = scmp.lt.u32.totalorder %s958_s10, %s1007_s3 }
 0x33d   : > { %p707_p1 = scmp.lt.u32.totalorder %s705_s19, %s701_s7  ;;  %p709_p6 = scmp.lt.u32.totalorder %s701_s7, %s958_s10 }
 0x33e   : > { %p703_p5 = pnand %p702_p4, %p1014_p11 }
 0x33f   : > { %p708_p3 = por %p707_p1, %p706_p9 }
 0x340   : > { %p704_p7 = pneg %p703_p5 }
 0x341   : > { %p710_p12 = por %p709_p6, %p708_p3 }
 0x343   : > { %p711_p13 = pnand %p710_p12, %p704_p7 }
 0x345   : > { %714 = shalt.err (!%p711_p13)
}
 0x346   : > { %s762_s26 = smov 256   ;;  %s763_s27 = smov 16  }
 0x347   : > { %598 = dma.vmem_to_hbm [thread:$0]  (%p1014_p11), %s953_s28, 1024, %s958_s10, %s461_s16, %s762_s26, %s762_s26, %s763_s27  }
 0x348 PF: > { %s489_s29 = sand.u32 1, %s741_s12   ;;  %p1015_p8 = scmp.ne.s32.totalorder %s1012_s25, 0 }
 0x349   : > { %p1016_p10 = scmp.ge.s32.totalorder %s753_s15, 2  ;;  %s490_s30 = scalar_lea.sflag [#allocation4], %s489_s29 }
 0x34b   : > { %p605_p0 = pnand %p1016_p10, %p1015_p8 }
 0x34d   : > { %736 = dma.done.wait (!%p605_p0), %s490_s30, 1024  }
 0x34e   : > { %738 = vsyncadd (!%p605_p0), %s490_s30, 4294966272  ;;  %p16_p2 = scmp.ge.s32.totalorder %s809_s18, 4   ;;  %s1017_s12 = smov %s745_s13 }
 0x34f   : > { %s1018_s13 = smov %s749_s14  ;;  %s1019_s14 = smov %s821_s21 }
 0x350   : > { %s1020_s15 = smov %s809_s18  ;;  %18 = sbr.rel (!%p16_p2) target bundleno = 5 (0x5), region = 77 }
 0x357   :  { %495 = vsyncpa [#allocation3], 1 }
 0x358   :  { %497 = vsyncpa [#allocation3 + $0x1], 1 }
 0x359   :  { %498 = vsyncpa [#allocation4], 1 }
 0x35a   :  { %500 = vsyncpa [#allocation4 + $0x1], 1 }

</bundles_post_ra>
